<compile_context>
chip_gen: v7x
topology: tpu7x:2x2x1
jax: 0.10.0
libtpu: 0.0.40
codegen_flags: <defaults>
</compile_context>

<pallas_src>
import jax
import jax.numpy as jnp
from jax.experimental import pallas as pl
from jax.experimental.pallas import tpu as pltpu


_LANES = 128
_SUBLANES = 8
_TARGET_BLOCK_BYTES = 4 << 20     # ~4 MiB/block; x(in+out) x(double buf) = 16 MiB
_SINGLE_BLOCK_BYTES = 4 << 20     # whole-array single block below this size


def _copy_kernel(e_ref, o_ref):
    # Pure pass-through of the (tiled) edge tensor.
    o_ref[...] = e_ref[...]


def _tile_rows_for(rows, row_bytes):
    # Target ~_TARGET_BLOCK_BYTES per block, multiple of 8 sublanes, capped by
    # the (8-rounded) row extent of the array.
    t = max(_SUBLANES,
            (_TARGET_BLOCK_BYTES // max(row_bytes, 1)) // _SUBLANES * _SUBLANES)
    cap = max(_SUBLANES, (rows // _SUBLANES) * _SUBLANES)
    return min(t, cap)


def _pallas_copy_2d(x):
    """Tiled Pallas copy of a 2-D array (rows split across the grid)."""
    rows, cols = x.shape
    itemsize = jnp.dtype(x.dtype).itemsize
    total_bytes = rows * cols * itemsize

    if total_bytes <= _SINGLE_BLOCK_BYTES:
        # Single full-array block: always layout-legal (block dims == array
        # dims), one DMA in, one DMA out, no masking concerns.
        spec = pl.BlockSpec((rows, cols), lambda: (0, 0))
        grid = ()
        dims = None
    else:
        tile_rows = _tile_rows_for(rows, cols * itemsize)
        spec = pl.BlockSpec((tile_rows, cols), lambda i: (i, 0))
        grid = (pl.cdiv(rows, tile_rows),)      # cdiv: no divisibility assert
        dims = ("parallel",)                    # lets v7x's 2 TCs split rows

    compiler_params = (pltpu.CompilerParams(dimension_semantics=dims)
                       if dims is not None else pltpu.CompilerParams())

    return pl.pallas_call(
        _copy_kernel,
        out_shape=jax.ShapeDtypeStruct((rows, cols), x.dtype),
        grid_spec=pltpu.PrefetchScalarGridSpec(
            num_scalar_prefetch=0,
            grid=grid,
            in_specs=[spec],
            out_specs=spec,
        ),
        # Output aliases the input: under jit-with-donation this removes the
        # extra HBM allocation / write entirely.
        input_output_aliases={0: 0},
        compiler_params=compiler_params,
    )(x)


def e_i_forward(inputs, *, materialize=False):
    """Pallas implementation of E_I.forward((G, V, E)) -> E."""
    G, V, E = inputs  # G, V intentionally unused (module semantics)
    del G, V

    if not materialize:
        # Identity fast path: no kernel, no HBM traffic.
        return E

    n = E.size
    if n % _LANES == 0:
        # Lane-dense view: last dim exactly 128 -> unmasked full-lane stores.
        flat = E.reshape(n // _LANES, _LANES)
        return _pallas_copy_2d(flat).reshape(E.shape)

    # Fallback for shapes that don't flatten to lane multiples: tile rows with
    # a full-width last dim (legal since the block's last dim equals the
    # array's last dim).
    e2d = E if E.ndim == 2 else E.reshape(-1, E.shape[-1])
    return _pallas_copy_2d(e2d).reshape(E.shape)


if __name__ == "__main__":
    key = jax.random.PRNGKey(0)
    kg, kv, ke = jax.random.split(key, 3)

    # Small synthetic graph-style inputs: adjacency-ish G, vertex feats V, edge feats E.
    G = jax.random.normal(kg, (2, 4, 16, 16), dtype=jnp.float32)
    V = jax.random.normal(kv, (16, 32), dtype=jnp.float32)
    E = jax.random.normal(ke, (16, 32), dtype=jnp.float32)

    # Default path: pure identity (the recommended implementation).
    out = jax.block_until_ready(e_i_forward((G, V, E)))
    assert out.shape == E.shape and out.dtype == E.dtype
    assert bool(jnp.allclose(out, E))

    # Materialized Pallas path, lane-dense single-block branch (512 elems -> (4, 128)).
    out_m = jax.block_until_ready(e_i_forward((G, V, E), materialize=True))
    assert out_m.shape == E.shape and out_m.dtype == E.dtype
    assert bool(jnp.allclose(out_m, E))

    # Materialized Pallas path, lane-dense branch with more rows ((256, 64) -> (128, 128)).
    E2 = jax.random.normal(ke, (256, 64), dtype=jnp.float32)
    out2 = jax.block_until_ready(e_i_forward((G, V, E2), materialize=True))
    assert out2.shape == E2.shape and out2.dtype == E2.dtype
    assert bool(jnp.allclose(out2, E2))

    # Materialized Pallas path, full-width fallback branch (last dim 17, not a
    # multiple of 128).
    E3 = jax.random.normal(ke, (16, 17), dtype=jnp.float32)
    out3 = jax.block_until_ready(e_i_forward((G, V, E3), materialize=True))
    assert out3.shape == E3.shape and out3.dtype == E3.dtype
    assert bool(jnp.allclose(out3, E3))

    # Materialized Pallas path, 3-D edge tensor ((2, 16, 32) -> (8, 128)).
    E4 = jax.random.normal(ke, (2, 16, 32), dtype=jnp.float32)
    out4 = jax.block_until_ready(e_i_forward((G, V, E4), materialize=True))
    assert out4.shape == E4.shape and out4.dtype == E4.dtype
    assert bool(jnp.allclose(out4, E4))

    print("KERNEL_OK")
</pallas_src>

<mosaic_0001>
module attributes {stable_mosaic.version = 11 : i64} {
  func.func @_copy_kernel(%arg0: memref<4x128xf32, #tpu.memory_space<vmem>>, %arg1: memref<4x128xf32, #tpu.memory_space<vmem>>) attributes {dimension_semantics = [], scalar_prefetch = 0 : i64, scratch_operands = 0 : i64, tpu.core_type = #tpu.core_type<tc>} {
    %c0 = arith.constant 0 : index
    %c0_0 = arith.constant 0 : index
    %0 = vector.load %arg0[%c0, %c0_0] : memref<4x128xf32, #tpu.memory_space<vmem>>, vector<4x128xf32>
    %c0_1 = arith.constant 0 : index
    %c0_2 = arith.constant 0 : index
    %1 = vector.load %arg1[%c0_1, %c0_2] : memref<4x128xf32, #tpu.memory_space<vmem>>, vector<4x128xf32>
    tpu.vector_store %arg1[%c0_1, %c0_2], %0 {strides = array<i32>} : memref<4x128xf32, #tpu.memory_space<vmem>>, vector<4x128xf32>,
    return
  }
}

</mosaic_0001>

<bundles_post_ra>
// kernel: tpu_custom_call.1
= control target key start
LH: loop header
LB: loop body
LE: loop exit
PB: predicated region body
PF: predicated region fallthrough
CT: control target
= control target key end

     0   :  { %6 = vsyncpa [#allocation3], 0  ;;  %s124_s0 = inlined_call_operand.hbm [shape: f32[4,128], index: 0, kind: input, shape index: {}, may-alias: {0,1}]   ;;  %s125_s1 = inlined_call_operand.hbm [shape: f32[4,128], index: 1, kind: output, shape index: {}, may-alias: {0,1}]  }
   0x1   :  { %7 = vsyncpa [#allocation4], 0  ;;  %s88_s6 = smov [#allocation2]   ;;  %s40_s10 = scalar_lea.hbm %s124_s0, 64 }
   0x2   :  { %s14_s7 = sshll.u32 %s88_s6, 4  ;;  %p41_p0 = scmp.ne.s32.totalorder %s124_s0, %s40_s10  ;;  %s15_s7 = int_to_ptr.vmem [resolvable:$true] %s14_s7 }
   0x3   :  { %p44_p1 = scmp.lt.u32.totalorder %s40_s10, %s124_s0 }
   0x5   :  { %p46_p2 = pnand %p44_p1, %p41_p0 }
   0x7   :  { %49 = shalt.err (!%p46_p2)
}
   0x8   :  { %s50_s15 = scalar_lea.vmem %s15_s7, 64  ;;  %p55_p4 = scmp.lt.s32.totalorder %s15_s7, %s15_s7 }
   0x9   :  { %p51_p3 = scmp.ne.s32.totalorder %s15_s7, %s50_s15  ;;  %p56_p5 = scmp.lt.s32.totalorder %s50_s15, %s50_s15 }
   0xb   :  { %p57_p6 = por %p56_p5, %p55_p4 }
   0xd   :  { %p58_p7 = pnand %p57_p6, %p51_p3 }
   0xf   :  { %61 = shalt.err (!%p58_p7)
}
  0x10   :  { %17 = dma.hbm_to_vmem [thread:$0]  %s124_s0, 64, %s15_s7, [#allocation3]  }
  0x11   :  { %84 = dma.done.wait [#allocation3], 64  }
  0x12   :  { %85 = vsyncadd [#allocation3], 4294967232  ;;  %s89_s18 = smov [#allocation5]   ;;  %v21_v0 = vld [vmem:[#allocation2] sm:$0xf] }
  0x13   :  { %s29_s19 = sshll.u32 %s89_s18, 4  ;;  %22 = vst [vmem:[#allocation5] sm:$0xf] %v21_v0  ;;  %s30_s19 = int_to_ptr.vmem [resolvable:$true] %s29_s19 }
  0x14   :  { %s62_s20 = scalar_lea.vmem %s30_s19, 64  ;;  %p67_p9 = scmp.lt.s32.totalorder %s30_s19, %s30_s19 }
  0x15   :  { %p63_p8 = scmp.ne.s32.totalorder %s30_s19, %s62_s20  ;;  %p68_p10 = scmp.lt.s32.totalorder %s62_s20, %s62_s20 }
  0x17   :  { %p69_p11 = por %p68_p10, %p67_p9 }
  0x19   :  { %p70_p12 = pnand %p69_p11, %p63_p8 }
  0x1b   :  { %73 = shalt.err (!%p70_p12)
}
  0x1c   :  { %s74_s23 = scalar_lea.hbm %s125_s1, 64 }
  0x1d   :  { %p75_p13 = scmp.ne.s32.totalorder %s125_s1, %s74_s23  ;;  %p78_p0 = scmp.lt.u32.totalorder %s74_s23, %s125_s1 }
  0x1f   :  { %p80_p1 = pnand %p78_p0, %p75_p13 }
  0x21   :  { %83 = shalt.err (!%p80_p1)
}
  0x22   :  { %32 = dma.vmem_to_hbm [thread:$0]  %s30_s19, 64, %s125_s1, [#allocation4]  }
  0x23   :  { %86 = dma.done.wait [#allocation4], 64  }
  0x24   :  { %87 = vsyncadd [#allocation4], 4294967232 }
  0x25   :  { %36 = vsyncpa [#allocation3], 1 }
  0x26   :  { %37 = vsyncpa [#allocation4], 1 }

</bundles_post_ra>
